<compile_context>
chip_gen: v5e
topology: v5e:2x2
jax: 0.10.0
libtpu: 0.0.40
codegen_flags: <defaults>
</compile_context>

<pallas_src>
import functools

import numpy as np
import jax
import jax.numpy as jnp
from jax import lax
from jax.experimental import pallas as pl
from jax.experimental.pallas import tpu as pltpu


# ----------------------------------------------------------------------------
# Kernel 1: per-output-channel weight normalization + magnitude-preserve scale
# ----------------------------------------------------------------------------
def _normalize_weight_kernel(w_ref, o_ref, *, eps, fan_in, gain):
    # w_ref: (O, K*K*C) f32, columns already in tap-major / channel-minor order
    #        (the layout the conv matmul consumes directly).
    w = w_ref[...].astype(jnp.float32)
    norm = jnp.sqrt(jnp.sum(w * w, axis=1, keepdims=True))            # (O, 1)
    denom = np.float32(eps) + norm * np.float32(np.sqrt(1.0 / fan_in))
    w = (w / denom) * np.float32(gain / np.sqrt(fan_in))
    o_ref[...] = w.astype(o_ref.dtype)                                # w.to(x.dtype)


# ----------------------------------------------------------------------------
# Kernel 2: conv2d ("same" padding) -- im2col into VMEM scratch + one matmul
# ----------------------------------------------------------------------------
def _mpconv2d_kernel(x_ref, w_ref, o_ref, patches_ref, *, K, H, W):
    # x_ref:       (1, C, H*W)      one NCHW image, H*W flattened on lanes
    # w_ref:       (O, K*K*C)       normalized weight, tap-major columns
    # o_ref:       (1, O, H*W)      output in flattened NCHW layout
    # patches_ref: (K*K*C, H*W)     VMEM im2col scratch
    p = K // 2
    HW = H * W
    C = patches_ref.shape[0] // (K * K)

    # Zero the scratch once; each tap only overwrites its in-bounds flat range,
    # so the untouched lanes provide the zero padding of the h-edges.
    patches_ref[...] = jnp.zeros(patches_ref.shape, patches_ref.dtype)

    # Column (w) coordinate of every flattened output position -- hoisted out
    # of the tap loop (used for W-edge masking only).
    col = lax.broadcasted_iota(jnp.int32, (C, HW), 1) % W

    # im2col: K*K static, fixed-bounds lane slices.  Row block t*C..t*C+C of
    # the scratch holds tap t = kh*K + kw, matching the weight column order.
    for kh in range(K):
        for kw in range(K):
            dy, dx = kh - p, kw - p
            delta = dy * W + dx
            t = kh * K + kw
            q_lo = max(0, -delta)          # first output pos whose source is in [0, HW)
            q_hi = min(HW, HW - delta)     # one past the last such output pos
            L = q_hi - q_lo                # = HW - |delta|
            src = x_ref[0, :, pl.ds(q_lo + delta, L)]                 # (C, L)
            if dx != 0:
                # mask positions whose shifted w coordinate wraps a row edge
                w_of_q = col[:, q_lo:q_hi]
                valid = jnp.logical_and(w_of_q + dx >= 0, w_of_q + dx < W)
                src = jnp.where(valid, src, jnp.zeros_like(src))
            patches_ref[pl.ds(t * C, C), pl.ds(q_lo, L)] = src

    # Whole-image conv as a single MXU matmul: contraction depth K*K*C,
    # lane-dense (H*W) output, f32 accumulation with x.dtype operands.
    acc = jnp.dot(w_ref[...], patches_ref[...],
                  preferred_element_type=jnp.float32)                 # (O, HW)
    o_ref[0] = acc.astype(o_ref.dtype)


# ----------------------------------------------------------------------------
# Wrapper (only free reshapes + a tiny weight permutation outside the kernels)
# ----------------------------------------------------------------------------
def mpconv_forward(x, weight, gain=1.0, eps=1e-4):
    """MPConv forward (eval mode). x: (N, C, H, W), weight: (O, C, K, K) -> NCHW."""
    O, C, kh_, kw_ = weight.shape
    assert kh_ == kw_, "square kernels only"
    K = kh_
    assert K % 2 == 1, "odd kernel size required so padding=K//2 preserves H, W"
    N, Cx, H, W = x.shape
    assert Cx == C
    fan_in = C * K * K
    KKC = K * K * C
    HW = H * W

    # ---- kernel 1: weight normalization (emits matmul-ready layout) --------
    # (O, C, K, K) -> (O, K, K, C) -> (O, K*K*C): tap-major / channel-minor so
    # each conv tap is a contiguous row block of the im2col matrix.  The weight
    # is tiny, this permutation is negligible, and the per-output-channel norm
    # is invariant to the intra-row reordering.
    w_perm = jnp.transpose(weight.astype(jnp.float32), (0, 2, 3, 1)).reshape(O, KKC)
    w_norm = pl.pallas_call(
        functools.partial(_normalize_weight_kernel,
                          eps=eps, fan_in=fan_in, gain=gain),
        out_shape=jax.ShapeDtypeStruct((O, KKC), x.dtype),
    )(w_perm)

    # ---- kernel 2: convolution ----------------------------------------------
    x_flat = x.reshape(N, C, HW)                 # free contiguous reshape (NCHW kept)

    out_flat = pl.pallas_call(
        functools.partial(_mpconv2d_kernel, K=K, H=H, W=W),
        grid=(N,),
        in_specs=[
            pl.BlockSpec((1, C, HW), lambda n: (n, 0, 0)),
            pl.BlockSpec((O, KKC), lambda n: (0, 0)),
        ],
        out_specs=pl.BlockSpec((1, O, HW), lambda n: (n, 0, 0)),
        out_shape=jax.ShapeDtypeStruct((N, O, HW), x.dtype),
        scratch_shapes=[pltpu.VMEM((KKC, HW), x.dtype)],
        compiler_params=pltpu.CompilerParams(
            dimension_semantics=("parallel",),        # batch split across TCs (v7x)
            vmem_limit_bytes=48 * 1024 * 1024),       # above 16/32 MiB defaults,
                                                      # below v7x's 64 MiB physical
    )(x_flat, w_norm)

    return out_flat.reshape(N, O, H, W)              # free reshape back to NCHW


# ----------------------------------------------------------------------------
# Reference (plain JAX) for verification
# ----------------------------------------------------------------------------
def _mpconv_reference(x, weight, gain=1.0, eps=1e-4):
    O, C, kh, kw = weight.shape
    fan_in = C * kh * kw
    w32 = weight.astype(jnp.float32)
    norm = jnp.sqrt(jnp.sum(w32 * w32, axis=(1, 2, 3), keepdims=True))
    norm = eps + norm * np.sqrt(1.0 / fan_in)
    w_eff = (w32 / norm) * (gain / np.sqrt(fan_in))
    p = kw // 2
    return lax.conv_general_dilated(
        x, w_eff.astype(x.dtype), window_strides=(1, 1),
        padding=[(p, p), (p, p)],
        dimension_numbers=("NCHW", "OIHW", "NCHW"))


if __name__ == "__main__":
    key = jax.random.PRNGKey(0)
    kx, kw_ = jax.random.split(key)

    N, C_in, H, W = 2, 4, 16, 16
    C_out, K = 8, 3

    x = jax.random.normal(kx, (N, C_in, H, W), dtype=jnp.float32)
    # deterministic stand-in for torch.randn(out, in, *kernel)
    weight = jax.random.normal(kw_, (C_out, C_in, K, K), dtype=jnp.float32)

    out = mpconv_forward(x, weight, gain=1.0)
    out = jax.block_until_ready(out)

    ref = jax.block_until_ready(_mpconv_reference(x, weight, gain=1.0))
    assert out.shape == (N, C_out, H, W)
    np.testing.assert_allclose(np.asarray(out), np.asarray(ref),
                               rtol=1e-4, atol=1e-4)
    print("KERNEL_OK")
</pallas_src>

<mosaic_0001>
module attributes {stable_mosaic.version = 11 : i64} {
  func.func @_normalize_weight_kernel(%arg0: memref<8x36xf32, #tpu.memory_space<vmem>>, %arg1: memref<8x36xf32, #tpu.memory_space<vmem>>) attributes {dimension_semantics = [], scalar_prefetch = 0 : i64, scratch_operands = 0 : i64, tpu.core_type = #tpu.core_type<tc>} {
    %c0 = arith.constant 0 : index
    %c0_0 = arith.constant 0 : index
    %0 = vector.load %arg0[%c0, %c0_0] : memref<8x36xf32, #tpu.memory_space<vmem>>, vector<8x36xf32>
    %1 = arith.mulf %0, %0 : vector<8x36xf32>
    %cst = arith.constant dense<0.000000e+00> : vector<8xf32>
    %2 = vector.multi_reduction <add>, %1, %cst [1] : vector<8x36xf32> to vector<8xf32>
    %3 = vector.shape_cast %2 : vector<8xf32> to vector<8x1xf32>
    %4 = math.sqrt %3 : vector<8x1xf32>
    %cst_1 = arith.constant 0.166666672 : f32
    %5 = vector.broadcast %cst_1 : f32 to vector<8x1xf32>
    %6 = arith.mulf %4, %5 : vector<8x1xf32>
    %cst_2 = arith.constant 9.99999974E-5 : f32
    %7 = vector.broadcast %cst_2 : f32 to vector<8x1xf32>
    %8 = arith.addf %7, %6 : vector<8x1xf32>
    %9 = vector.broadcast %8 : vector<8x1xf32> to vector<8x36xf32>
    %10 = arith.divf %0, %9 : vector<8x36xf32>
    %cst_3 = arith.constant 0.166666672 : f32
    %11 = vector.broadcast %cst_3 : f32 to vector<8x36xf32>
    %12 = arith.mulf %10, %11 : vector<8x36xf32>
    %c0_4 = arith.constant 0 : index
    %c0_5 = arith.constant 0 : index
    %13 = vector.load %arg1[%c0_4, %c0_5] : memref<8x36xf32, #tpu.memory_space<vmem>>, vector<8x36xf32>
    tpu.vector_store %arg1[%c0_4, %c0_5], %12 {strides = array<i32>} : memref<8x36xf32, #tpu.memory_space<vmem>>, vector<8x36xf32>,
    return
  }
}

</mosaic_0001>

<bundles_post_ra>
// kernel: tpu_custom_call.1
= control target key start
LH: loop header
LB: loop body
LE: loop exit
PB: predicated region body
PF: predicated region fallthrough
CT: control target
= control target key end

     0   :  { %6 = vsyncpa [#allocation3], 0  ;;  %s155_s0 = inlined_call_operand.hbm [shape: f32[8,36], index: 0, kind: input, shape index: {}]   ;;  %s156_s1 = inlined_call_operand.hbm [shape: f32[8,36], index: 1, kind: output, shape index: {}]  }
   0x1   :  { %7 = vsyncpa [#allocation4], 0  ;;  %s13_s8 = sshll.u32 %s155_s0, 4  ;;  %s135_s9 = smov [#allocation2]   ;;  %s14_s8 = int_to_ptr.hbm [resolvable:$true] %s13_s8 }
   0x2   :  { %s15_s10 = sshll.u32 %s135_s9, 4  ;;  %s16_s10 = int_to_ptr.vmem [resolvable:$true] %s15_s10 }
   0x3   :  { %18 = dma.hbm_to_vmem [thread:$0]  %s14_s8, 128, %s16_s10, [#allocation3]  }
   0x4   :  { %131 = dma.done.wait [#allocation3], 128  }
   0x5   :  { %132 = vsyncadd [#allocation3], 4294967168  ;;  %v23_v0 = vld [vmem:[#allocation2] sm:$0xff]  ;;  %vm25_vm0 = vcmask 293888   ;;  %s136_s0 = smov [#allocation5]   ;;  %s67_s14 = sshll.u32 %s156_s1, 4  ;;  %s68_s14 = int_to_ptr.hbm [resolvable:$true] %s67_s14 }
   0x6   :  { %v24_v1 = vmul.f32 %v23_v0, %v23_v0  ;;  %s65_s11 = sshll.u32 %s136_s0, 4  ;;  %s66_s11 = int_to_ptr.vmem [resolvable:$true] %s65_s11 }
   0x8   :  { %v26_v2 = vsel %vm25_vm0, %v24_v1, 0.0 }
   0x9   :  { %27 = vadd.xlane.f32.xlu0 %v26_v2 }
  0x7c   :  { %v28_v3 = vpop.xlane.xlu0 %27 }
  0x7d   :  { %79 = vrsqrt.f32 %v28_v3  ;;  %vm36_vm1 = vcmp.eq.f32.partialorder %v28_v3, inf  ;;  %v39_v11 = vand.u32 2147483648, %v28_v3  ;;  %vm38_vm2 = vcmp.eq.f32.partialorder %v28_v3, 0.0 }
  0x83   :  { %v80_v4 = vpop.eup %79 }
  0x84   :  { %v30_v5 = vmul.f32 %v80_v4, %v28_v3 }
  0x86   :  { %v31_v6 = vmul.f32 %v80_v4, %v30_v5 }
  0x88   :  { %v32_v7 = vmul.f32 0.5, %v31_v6 }
  0x8a   :  { %v33_v8 = vsub.f32 1.5, %v32_v7 }
  0x8c   :  { %v34_v9 = vmul.f32 %v80_v4, %v33_v8 }
  0x8e   :  { %v35_v10 = vmul.f32 %v34_v9, %v28_v3 }
  0x90   :  { %v37_v12 = vsel %vm36_vm1, %v28_v3, %v35_v10 }
  0x91   :  { %v40_v13 = vsel %vm38_vm2, %v39_v11, %v37_v12 }
  0x92   :  { %v41_v14 = vmul.f32 0.16666667, %v40_v13 }
  0x94   :  { %v42_v15 = vadd.f32 0.0001, %v41_v14 }
  0x96   :  { %81 = vrcp.f32 %v42_v15  ;;  %v54_v19 = vand.u32 2147483648, %v42_v15  ;;  %v52_v21 = vand.u32 2147483647, %v42_v15  ;;  %vm48_vm4 = vweird.f32 %v42_v15 }
  0x98   :  { %v55_v23 = vor.u32 1.1754944e-38, %v54_v19  ;;  %vm53_vm6 = vcmp.eq.f32.partialorder %v52_v21, 8.507059e+37 }
  0x9c   :  { %v82_v16 = vpop.eup %81 }
  0x9d   :  { %v44_v17 = vmul.f32 %v82_v16, %v42_v15  ;;  %vm49_vm3 = vweird.f32 %v82_v16 }
  0x9e   :  { %vm50_vm5 = vmor %vm48_vm4, %vm49_vm3 }
  0x9f   :  { %v45_v18 = vsub.f32 1.0, %v44_v17 }
  0xa1   :  { %v46_v20 = vmul.f32 %v82_v16, %v45_v18 }
  0xa3   :  { %v47_v22 = vadd.f32 %v82_v16, %v46_v20 }
  0xa5   :  { %v51_v24 = vsel %vm50_vm5, %v82_v16, %v47_v22 }
  0xa6   :  { %v56_v25 = vsel %vm53_vm6, %v55_v23, %v51_v24 }
  0xa7   :  { %v57_v26 = vmul.f32 %v56_v25, %v23_v0 }
  0xa9   :  { %v58_v27 = vmul.f32 0.16666667, %v57_v26 }
  0xab   :  { %59 = vst.msk [vmem:[#allocation5] sm:$0xff] %vm25_vm0, %v58_v27 }
  0xac   :  { %70 = dma.vmem_to_hbm [thread:$0]  %s66_s11, 128, %s68_s14, [#allocation4]  }
  0xad   :  { %133 = dma.done.wait [#allocation4], 128  }
  0xae   :  { %134 = vsyncadd [#allocation4], 4294967168 }
  0xaf   :  { %75 = vsyncpa [#allocation3], 1 }
  0xb0   :  { %76 = vsyncpa [#allocation4], 1 }

</bundles_post_ra>
